<compile_context>
chip_gen: v7x
topology: tpu7x:2x2x1
jax: 0.10.0
libtpu: 0.0.40
codegen_flags: <defaults>
</compile_context>

<pallas_src>
import math
import jax
import jax.numpy as jnp
from jax.experimental import pallas as pl
from jax.experimental.pallas import tpu as pltpu

# ---- schedule constants (cosine_schedule with start=0, end=1, tau=1, scale=1) ----
SCALE = 1.0
_POWER = 2.0
_V_START = math.cos(0.0 * math.pi / 2) ** _POWER          # 1.0
_V_END = math.cos(1.0 * math.pi / 2) ** _POWER            # ~3.75e-33
_LOG_SCALE_SHIFT = 2.0 * math.log(SCALE)                  # 0.0 for scale=1


def _time_to_alpha(t):
    """train_schedule: time -> alpha (matches time_to_alpha in the reference)."""
    out = jnp.cos(t * (math.pi / 2)) ** _POWER             # cosine_schedule core
    out = (_V_END - out) / (_V_END - _V_START)
    alpha = jnp.maximum(out, 1e-9)                          # .clamp(min=clip_min)
    # alpha_to_shifted_log_snr
    log_snr = jnp.log(jnp.maximum(alpha / (1.0 - alpha), 1e-12))
    log_snr = jnp.clip(log_snr, -15.0, 15.0) + _LOG_SCALE_SHIFT
    # log_snr_to_alpha
    return jax.nn.sigmoid(log_snr)


def _round_up(n, m):
    return ((n + m - 1) // m) * m


def _pad_to(a, shape):
    pads = [(0, s - d) for d, s in zip(a.shape, shape)]
    if all(p == (0, 0) for p in pads):
        return a
    return jnp.pad(a, pads)


# ----------------------------- Pallas kernel -------------------------------------
def _diffusion_row_kernel(x_ref, n_ref, sa_ref, s1_ref, w_ref,
                          w1_ref, b1_ref, tw_ref, w2_ref, b2_ref,
                          xstart_ref, rowloss_ref):
    x = x_ref[...]            # (TR, Dp)  txt_latent rows
    nz = n_ref[...]           # (TR, Dp)  noise rows
    sa = sa_ref[...]          # (TR, 1)   sqrt(alpha) per row
    s1 = s1_ref[...]          # (TR, 1)   sqrt(1 - alpha) per row

    # ---- q_sample: z_t = sqrt(a)*x + sqrt(1-a)*noise ----
    z_t = sa * x + s1 * nz

    # ---- token-wise MLP denoiser (stand-in for self.diffusion_model) ----
    # time_cond = train_schedule(times) = alpha, as in diffusion_model_predictions.
    alpha = sa * sa                                   # (TR, 1)
    t_emb = alpha * tw_ref[...]                       # (TR, Hp)
    h = jnp.dot(z_t.astype(jnp.bfloat16), w1_ref[...],
                preferred_element_type=jnp.float32)   # MXU, (TR, Hp) f32
    h = jnp.tanh(h + b1_ref[...] + t_emb)
    pred_v = jnp.dot(h.astype(jnp.bfloat16), w2_ref[...],
                     preferred_element_type=jnp.float32) + b2_ref[...]   # (TR, Dp)

    # ---- predict_start_from_v ----
    xstart_ref[...] = sa * z_t - s1 * pred_v

    # ---- v-objective target fused into the squared error; weighted per-row sum ----
    # weight already encodes mask / (n_valid * D * B), so sum(row_loss) == final loss.
    diff = pred_v - (sa * nz - s1 * x)
    rowloss_ref[...] = jnp.sum(diff * diff, axis=1, keepdims=True) * w_ref[...]


# ------------------------------- wrapper ------------------------------------------
def gaussian_diffusion_forward(txt_latent, noise, times, mask, params, *, block_rows=256):
    """Returns (loss_scalar, pred_x_start) — matches forward(..., return_x_start=True)."""
    B, L, D = txt_latent.shape
    H = params["w1"].shape[1]
    if block_rows % 8 != 0:
        raise ValueError("block_rows must be a multiple of 8")

    R = B * L
    TR = block_rows
    Rp = _round_up(R, TR)
    Dp = _round_up(D, 128)
    Hp = _round_up(H, 128)

    # ---- per-sample schedule on the scalar path (B elements; stays in XLA) ----
    alpha_b = _time_to_alpha(times.reshape(B).astype(jnp.float32))     # (B,)
    sa_b = jnp.sqrt(alpha_b)
    s1_b = jnp.sqrt(1.0 - alpha_b)

    maskf = mask.astype(jnp.float32)                                   # (B, L)
    n_valid = jnp.maximum(jnp.sum(maskf, axis=1), 1.0)                 # clamp empty samples
    w_b = 1.0 / (n_valid * float(D) * float(B))                        # per-sample weight
    w_row = (maskf * w_b[:, None]).reshape(R, 1)
    sa_row = jnp.repeat(sa_b, L).reshape(R, 1)
    s1_row = jnp.repeat(s1_b, L).reshape(R, 1)

    x_rows = txt_latent.astype(jnp.float32).reshape(R, D)
    n_rows = noise.astype(jnp.float32).reshape(R, D)

    # lane-dense / MXU-aligned zero padding (padded lanes contribute exactly 0 loss)
    x_p = _pad_to(x_rows, (Rp, Dp))
    n_p = _pad_to(n_rows, (Rp, Dp))
    sa_p = _pad_to(sa_row, (Rp, 1))
    s1_p = _pad_to(s1_row, (Rp, 1))
    w_p = _pad_to(w_row, (Rp, 1))

    w1_p = _pad_to(params["w1"].astype(jnp.float32), (Dp, Hp)).astype(jnp.bfloat16)
    b1_p = _pad_to(params["b1"].astype(jnp.float32), (1, Hp))
    tw_p = _pad_to(params["tw"].astype(jnp.float32), (1, Hp))
    w2_p = _pad_to(params["w2"].astype(jnp.float32), (Hp, Dp)).astype(jnp.bfloat16)
    b2_p = _pad_to(params["b2"].astype(jnp.float32), (1, Dp))

    grid = (Rp // TR,)
    x_start_rows, row_loss = pl.pallas_call(
        _diffusion_row_kernel,
        grid=grid,
        in_specs=[
            pl.BlockSpec((TR, Dp), lambda i: (i, 0)),   # txt_latent rows
            pl.BlockSpec((TR, Dp), lambda i: (i, 0)),   # noise rows
            pl.BlockSpec((TR, 1), lambda i: (i, 0)),    # sqrt(alpha) per row
            pl.BlockSpec((TR, 1), lambda i: (i, 0)),    # sqrt(1-alpha) per row
            pl.BlockSpec((TR, 1), lambda i: (i, 0)),    # per-row loss weight
            pl.BlockSpec((Dp, Hp), lambda i: (0, 0)),   # w1 (resident, bf16)
            pl.BlockSpec((1, Hp), lambda i: (0, 0)),    # b1
            pl.BlockSpec((1, Hp), lambda i: (0, 0)),    # time-cond proj
            pl.BlockSpec((Hp, Dp), lambda i: (0, 0)),   # w2 (resident, bf16)
            pl.BlockSpec((1, Dp), lambda i: (0, 0)),    # b2
        ],
        out_specs=(
            pl.BlockSpec((TR, Dp), lambda i: (i, 0)),   # pred_x_start rows
            pl.BlockSpec((TR, 1), lambda i: (i, 0)),    # per-row weighted loss partials
        ),
        out_shape=(
            jax.ShapeDtypeStruct((Rp, Dp), jnp.float32),
            jax.ShapeDtypeStruct((Rp, 1), jnp.float32),
        ),
        compiler_params=pltpu.CompilerParams(
            dimension_semantics=("parallel",),          # independent row tiles (2 TCs on v7x)
        ),
    )(x_p, n_p, sa_p, s1_p, w_p, w1_p, b1_p, tw_p, w2_p, b2_p)

    loss = jnp.sum(row_loss)                            # padded rows carry zero weight
    x_start = x_start_rows[:R, :D].reshape(B, L, D)
    return loss, x_start


# ---------------------------- pure-JAX reference -----------------------------------
def _reference_forward(txt_latent, noise, times, mask, params):
    B, L, D = txt_latent.shape
    alpha = _time_to_alpha(times.astype(jnp.float32))
    a = alpha.reshape(B, 1, 1)
    sa, s1 = jnp.sqrt(a), jnp.sqrt(1.0 - a)
    z_t = sa * txt_latent + s1 * noise
    t_emb = a * params["tw"].reshape(1, 1, -1)
    h = jnp.einsum("bld,dh->blh", z_t.astype(jnp.bfloat16),
                   params["w1"].astype(jnp.bfloat16),
                   preferred_element_type=jnp.float32)
    h = jnp.tanh(h + params["b1"].reshape(1, 1, -1) + t_emb)
    pred_v = jnp.einsum("blh,hd->bld", h.astype(jnp.bfloat16),
                        params["w2"].astype(jnp.bfloat16),
                        preferred_element_type=jnp.float32) + params["b2"].reshape(1, 1, -1)
    x_start = sa * z_t - s1 * pred_v
    target = sa * noise - s1 * txt_latent
    sq = (pred_v - target) ** 2
    m = mask.astype(jnp.float32)
    n_valid = jnp.maximum(jnp.sum(m, axis=1), 1.0)
    per_sample = jnp.sum(sq * m[:, :, None], axis=(1, 2)) / (n_valid * D)
    return jnp.mean(per_sample), x_start


def init_params(key, latent_dim, hidden_dim):
    k1, k2, k3 = jax.random.split(key, 3)
    return {
        "w1": (jax.random.normal(k1, (latent_dim, hidden_dim), jnp.float32)
               / math.sqrt(latent_dim)),
        "b1": jnp.zeros((1, hidden_dim), jnp.float32),
        "tw": jax.random.normal(k2, (1, hidden_dim), jnp.float32) * 0.1,
        "w2": (jax.random.normal(k3, (hidden_dim, latent_dim), jnp.float32)
               / math.sqrt(hidden_dim)),
        "b2": jnp.zeros((1, latent_dim), jnp.float32),
    }


if __name__ == "__main__":
    B, L, D, H = 2, 16, 128, 128      # batch, max_seq_len, latent_dim, hidden (lane/MXU aligned)
    key = jax.random.PRNGKey(0)
    k_x, k_n, k_t, k_p = jax.random.split(key, 4)

    txt_latent = jax.random.normal(k_x, (B, L, D), jnp.float32)
    noise = jax.random.normal(k_n, (B, L, D), jnp.float32)          # torch.randn_like
    times = jax.random.uniform(k_t, (B,), jnp.float32)              # .uniform_(0, 1)
    lengths = [L, 9]                                                # prefix masks
    mask = jnp.array([[j < n for j in range(L)] for n in lengths], dtype=jnp.bool_)
    params = init_params(k_p, D, H)

    # small block_rows so the demo exercises a multi-step pipelined grid (R=32 -> 4 tiles)
    loss, x_start = gaussian_diffusion_forward(txt_latent, noise, times, mask, params,
                                               block_rows=8)
    jax.block_until_ready((loss, x_start))

    ref_loss, ref_x_start = _reference_forward(txt_latent, noise, times, mask, params)
    assert x_start.shape == (B, L, D) and loss.shape == ()
    assert bool(jnp.isfinite(loss)) and bool(jnp.all(jnp.isfinite(x_start)))
    assert bool(jnp.allclose(loss, ref_loss, rtol=2e-2, atol=2e-2))
    assert bool(jnp.allclose(x_start, ref_x_start, rtol=2e-2, atol=2e-2))
    print("KERNEL_OK")
</pallas_src>

<mosaic_0001>
module attributes {stable_mosaic.version = 11 : i64} {
  func.func @_diffusion_row_kernel(%arg0: i32, %arg1: memref<8x128xf32, #tpu.memory_space<vmem>>, %arg2: memref<8x128xf32, #tpu.memory_space<vmem>>, %arg3: memref<8x1xf32, #tpu.memory_space<vmem>>, %arg4: memref<8x1xf32, #tpu.memory_space<vmem>>, %arg5: memref<8x1xf32, #tpu.memory_space<vmem>>, %arg6: memref<128x128xbf16, #tpu.memory_space<vmem>>, %arg7: memref<1x128xf32, #tpu.memory_space<vmem>>, %arg8: memref<1x128xf32, #tpu.memory_space<vmem>>, %arg9: memref<128x128xbf16, #tpu.memory_space<vmem>>, %arg10: memref<1x128xf32, #tpu.memory_space<vmem>>, %arg11: memref<8x128xf32, #tpu.memory_space<vmem>>, %arg12: memref<8x1xf32, #tpu.memory_space<vmem>>) attributes {dimension_semantics = [#tpu.dimension_semantics<parallel>], iteration_bounds = array<i64: 4>, scalar_prefetch = 0 : i64, scratch_operands = 0 : i64, tpu.core_type = #tpu.core_type<tc>, window_params = [{transform_indices = @transform_0, window_bounds = array<i64: 8, 128>}, {transform_indices = @transform_1, window_bounds = array<i64: 8, 128>}, {transform_indices = @transform_2, window_bounds = array<i64: 8, 1>}, {transform_indices = @transform_3, window_bounds = array<i64: 8, 1>}, {transform_indices = @transform_4, window_bounds = array<i64: 8, 1>}, {pipeline_mode = #tpu.pipeline_mode<synchronous>, transform_indices = @transform_5, window_bounds = array<i64: 128, 128>}, {pipeline_mode = #tpu.pipeline_mode<synchronous>, transform_indices = @transform_6, window_bounds = array<i64: 1, 128>}, {pipeline_mode = #tpu.pipeline_mode<synchronous>, transform_indices = @transform_7, window_bounds = array<i64: 1, 128>}, {pipeline_mode = #tpu.pipeline_mode<synchronous>, transform_indices = @transform_8, window_bounds = array<i64: 128, 128>}, {pipeline_mode = #tpu.pipeline_mode<synchronous>, transform_indices = @transform_9, window_bounds = array<i64: 1, 128>}, {transform_indices = @transform_10, window_bounds = array<i64: 8, 128>}, {transform_indices = @transform_11, window_bounds = array<i64: 8, 1>}]} {
    %c0 = arith.constant 0 : index
    %c0_0 = arith.constant 0 : index
    %0 = vector.load %arg1[%c0, %c0_0] : memref<8x128xf32, #tpu.memory_space<vmem>>, vector<8x128xf32>
    %c0_1 = arith.constant 0 : index
    %c0_2 = arith.constant 0 : index
    %1 = vector.load %arg2[%c0_1, %c0_2] : memref<8x128xf32, #tpu.memory_space<vmem>>, vector<8x128xf32>
    %c0_3 = arith.constant 0 : index
    %c0_4 = arith.constant 0 : index
    %2 = vector.load %arg3[%c0_3, %c0_4] : memref<8x1xf32, #tpu.memory_space<vmem>>, vector<8x1xf32>
    %c0_5 = arith.constant 0 : index
    %c0_6 = arith.constant 0 : index
    %3 = vector.load %arg4[%c0_5, %c0_6] : memref<8x1xf32, #tpu.memory_space<vmem>>, vector<8x1xf32>
    %4 = vector.broadcast %2 : vector<8x1xf32> to vector<8x128xf32>
    %5 = arith.mulf %4, %0 : vector<8x128xf32>
    %6 = vector.broadcast %3 : vector<8x1xf32> to vector<8x128xf32>
    %7 = arith.mulf %6, %1 : vector<8x128xf32>
    %8 = arith.addf %5, %7 : vector<8x128xf32>
    %9 = arith.mulf %2, %2 : vector<8x1xf32>
    %c0_7 = arith.constant 0 : index
    %c0_8 = arith.constant 0 : index
    %10 = vector.load %arg8[%c0_7, %c0_8] : memref<1x128xf32, #tpu.memory_space<vmem>>, vector<1x128xf32>
    %11 = vector.broadcast %9 : vector<8x1xf32> to vector<8x128xf32>
    %12 = vector.broadcast %10 : vector<1x128xf32> to vector<8x128xf32>
    %13 = arith.mulf %11, %12 : vector<8x128xf32>
    %14 = arith.truncf %8 : vector<8x128xf32> to vector<8x128xbf16>
    %c0_9 = arith.constant 0 : index
    %c0_10 = arith.constant 0 : index
    %15 = vector.load %arg6[%c0_9, %c0_10] : memref<128x128xbf16, #tpu.memory_space<vmem>>, vector<128x128xbf16>
    %cst = arith.constant dense<0.000000e+00> : vector<8x128xf32>
    %16 = tpu.matmul %14, %15, %cst {dimension_numbers = #tpu.dot_dimension_numbers<[1], [0], [0], [1], [0, 0, 1, 1], [], []>} : vector<8x128xbf16>, vector<128x128xbf16>, vector<8x128xf32> -> vector<8x128xf32>
    %c0_11 = arith.constant 0 : index
    %c0_12 = arith.constant 0 : index
    %17 = vector.load %arg7[%c0_11, %c0_12] : memref<1x128xf32, #tpu.memory_space<vmem>>, vector<1x128xf32>
    %18 = vector.broadcast %17 : vector<1x128xf32> to vector<8x128xf32>
    %19 = arith.addf %16, %18 : vector<8x128xf32>
    %20 = arith.addf %19, %13 : vector<8x128xf32>
    %21 = math.tanh %20 : vector<8x128xf32>
    %22 = arith.truncf %21 : vector<8x128xf32> to vector<8x128xbf16>
    %c0_13 = arith.constant 0 : index
    %c0_14 = arith.constant 0 : index
    %23 = vector.load %arg9[%c0_13, %c0_14] : memref<128x128xbf16, #tpu.memory_space<vmem>>, vector<128x128xbf16>
    %cst_15 = arith.constant dense<0.000000e+00> : vector<8x128xf32>
    %24 = tpu.matmul %22, %23, %cst_15 {dimension_numbers = #tpu.dot_dimension_numbers<[1], [0], [0], [1], [0, 0, 1, 1], [], []>} : vector<8x128xbf16>, vector<128x128xbf16>, vector<8x128xf32> -> vector<8x128xf32>
    %c0_16 = arith.constant 0 : index
    %c0_17 = arith.constant 0 : index
    %25 = vector.load %arg10[%c0_16, %c0_17] : memref<1x128xf32, #tpu.memory_space<vmem>>, vector<1x128xf32>
    %26 = vector.broadcast %25 : vector<1x128xf32> to vector<8x128xf32>
    %27 = arith.addf %24, %26 : vector<8x128xf32>
    %28 = vector.broadcast %2 : vector<8x1xf32> to vector<8x128xf32>
    %29 = arith.mulf %28, %8 : vector<8x128xf32>
    %30 = vector.broadcast %3 : vector<8x1xf32> to vector<8x128xf32>
    %31 = arith.mulf %30, %27 : vector<8x128xf32>
    %32 = arith.subf %29, %31 : vector<8x128xf32>
    %c0_18 = arith.constant 0 : index
    %c0_19 = arith.constant 0 : index
    %33 = vector.load %arg11[%c0_18, %c0_19] : memref<8x128xf32, #tpu.memory_space<vmem>>, vector<8x128xf32>
    tpu.vector_store %arg11[%c0_18, %c0_19], %32 {strides = array<i32>} : memref<8x128xf32, #tpu.memory_space<vmem>>, vector<8x128xf32>,
    %34 = vector.broadcast %2 : vector<8x1xf32> to vector<8x128xf32>
    %35 = arith.mulf %34, %1 : vector<8x128xf32>
    %36 = vector.broadcast %3 : vector<8x1xf32> to vector<8x128xf32>
    %37 = arith.mulf %36, %0 : vector<8x128xf32>
    %38 = arith.subf %35, %37 : vector<8x128xf32>
    %39 = arith.subf %27, %38 : vector<8x128xf32>
    %40 = arith.mulf %39, %39 : vector<8x128xf32>
    %cst_20 = arith.constant dense<0.000000e+00> : vector<8xf32>
    %41 = vector.multi_reduction <add>, %40, %cst_20 [1] : vector<8x128xf32> to vector<8xf32>
    %42 = vector.shape_cast %41 : vector<8xf32> to vector<8x1xf32>
    %c0_21 = arith.constant 0 : index
    %c0_22 = arith.constant 0 : index
    %43 = vector.load %arg5[%c0_21, %c0_22] : memref<8x1xf32, #tpu.memory_space<vmem>>, vector<8x1xf32>
    %44 = arith.mulf %42, %43 : vector<8x1xf32>
    %c0_23 = arith.constant 0 : index
    %c0_24 = arith.constant 0 : index
    %45 = vector.load %arg12[%c0_23, %c0_24] : memref<8x1xf32, #tpu.memory_space<vmem>>, vector<8x1xf32>
    tpu.vector_store %arg12[%c0_23, %c0_24], %44 {strides = array<i32>} : memref<8x1xf32, #tpu.memory_space<vmem>>, vector<8x1xf32>,
    return
  }
  func.func @transform_0(%arg0: i32) -> (i32, i32) {
    %c0_i32 = arith.constant 0 : i32
    %c0_i32_0 = arith.constant 0 : i32
    return %arg0, %c0_i32 : i32, i32
  }
  func.func @transform_1(%arg0: i32) -> (i32, i32) {
    %c0_i32 = arith.constant 0 : i32
    %c0_i32_0 = arith.constant 0 : i32
    return %arg0, %c0_i32 : i32, i32
  }
  func.func @transform_2(%arg0: i32) -> (i32, i32) {
    %c0_i32 = arith.constant 0 : i32
    %c0_i32_0 = arith.constant 0 : i32
    return %arg0, %c0_i32 : i32, i32
  }
  func.func @transform_3(%arg0: i32) -> (i32, i32) {
    %c0_i32 = arith.constant 0 : i32
    %c0_i32_0 = arith.constant 0 : i32
    return %arg0, %c0_i32 : i32, i32
  }
  func.func @transform_4(%arg0: i32) -> (i32, i32) {
    %c0_i32 = arith.constant 0 : i32
    %c0_i32_0 = arith.constant 0 : i32
    return %arg0, %c0_i32 : i32, i32
  }
  func.func @transform_5(%arg0: i32) -> (i32, i32) {
    %c0_i32 = arith.constant 0 : i32
    %c0_i32_0 = arith.constant 0 : i32
    %c0_i32_1 = arith.constant 0 : i32
    return %c0_i32, %c0_i32_0 : i32, i32
  }
  func.func @transform_6(%arg0: i32) -> (i32, i32) {
    %c0_i32 = arith.constant 0 : i32
    %c0_i32_0 = arith.constant 0 : i32
    %c0_i32_1 = arith.constant 0 : i32
    return %c0_i32, %c0_i32_0 : i32, i32
  }
  func.func @transform_7(%arg0: i32) -> (i32, i32) {
    %c0_i32 = arith.constant 0 : i32
    %c0_i32_0 = arith.constant 0 : i32
    %c0_i32_1 = arith.constant 0 : i32
    return %c0_i32, %c0_i32_0 : i32, i32
  }
  func.func @transform_8(%arg0: i32) -> (i32, i32) {
    %c0_i32 = arith.constant 0 : i32
    %c0_i32_0 = arith.constant 0 : i32
    %c0_i32_1 = arith.constant 0 : i32
    return %c0_i32, %c0_i32_0 : i32, i32
  }
  func.func @transform_9(%arg0: i32) -> (i32, i32) {
    %c0_i32 = arith.constant 0 : i32
    %c0_i32_0 = arith.constant 0 : i32
    %c0_i32_1 = arith.constant 0 : i32
    return %c0_i32, %c0_i32_0 : i32, i32
  }
  func.func @transform_10(%arg0: i32) -> (i32, i32) {
    %c0_i32 = arith.constant 0 : i32
    %c0_i32_0 = arith.constant 0 : i32
    return %arg0, %c0_i32 : i32, i32
  }
  func.func @transform_11(%arg0: i32) -> (i32, i32) {
    %c0_i32 = arith.constant 0 : i32
    %c0_i32_0 = arith.constant 0 : i32
    return %arg0, %c0_i32 : i32, i32
  }
}

</mosaic_0001>

<bundles_post_ra>
// kernel: tpu_custom_call.1
= control target key start
LH: loop header
LB: loop body
LE: loop exit
PB: predicated region body
PF: predicated region fallthrough
CT: control target
= control target key end

     0   :  { %s1711_s0 = inlined_call_operand.hbm [shape: f32[32,128], index: 0, kind: input, shape index: {}]   ;;  %s1712_s1 = inlined_call_operand.hbm [shape: f32[32,128], index: 1, kind: input, shape index: {}]   ;;  %s1713_s2 = inlined_call_operand.vmem [shape: f32[32,1], index: 2, kind: input, shape index: {}]   ;;  %s1714_s3 = inlined_call_operand.vmem [shape: f32[32,1], index: 3, kind: input, shape index: {}]   ;;  %s1715_s4 = inlined_call_operand.vmem [shape: f32[32,1], index: 4, kind: input, shape index: {}]   ;;  %s1716_s5 = inlined_call_operand.vmem [shape: bf16[128,128], index: 5, kind: input, shape index: {}]   ;;  %s1717_s6 = inlined_call_operand.vmem [shape: f32[1,128], index: 6, kind: input, shape index: {}]   ;;  %s1718_s7 = inlined_call_operand.hbm [shape: f32[1,128], index: 7, kind: input, shape index: {}]   ;;  %s1719_s8 = inlined_call_operand.vmem [shape: bf16[128,128], index: 8, kind: input, shape index: {}]   ;;  %s1720_s9 = inlined_call_operand.vmem [shape: f32[1,128], index: 9, kind: input, shape index: {}]   ;;  %s1721_s10 = inlined_call_operand.hbm [shape: f32[32,128], index: 10, kind: output, shape index: {0}]   ;;  %s1722_s11 = inlined_call_operand.vmem [shape: f32[32,1], index: 11, kind: output, shape index: {1}]  }
   0x1   :  { %1732 = sst [smem:[#allocation18_spill]] %s1715_s4 }
   0x2   :  { %1733 = sst [smem:[#allocation19_spill]] %s1718_s7 }
   0x3   :  { %1734 = sst [smem:[#allocation20_spill]] %s1722_s11 }
   0x4   :  { %17 = vsyncpa [#allocation3], 0 }
   0x5   :  { %19 = vsyncpa [#allocation3 + $0x1], 0 }
   0x6   :  { %20 = vsyncpa [#allocation6], 0 }
   0x7   :  { %22 = vsyncpa [#allocation6 + $0x1], 0 }
   0x8   :  { %23 = vsyncpa [#allocation4], 0 }
   0x9   :  { %25 = vsyncpa [#allocation4 + $0x1], 0  ;;  %s1383_s17 = smov 0   ;;  %s1385_s18 = smov 0  }
   0xa   :  { %s1387_s19 = smov 0   ;;  %s1389_s20 = smov 0  }
   0xb LB: > { %1735 = sst [smem:[#allocation13_spill]] %s1302_s17  ;;  %s1404_s21 = sadd.s32 4294967295, %s1314_s20   ;;  %s1314_s20 = sphi %s1389_s20, %s1762_s20   ;;  %s1310_s19 = sphi %s1387_s19, %s1764_s19   ;;  %s1306_s18 = sphi %s1385_s18, %s1766_s18   ;;  %s1302_s17 = sphi %s1383_s17, %s1765_s17  }
   0xc   : > { %1736 = sst [smem:[#allocation14_spill]] %s1310_s19  ;;  %s969_s22 = sadd.s32 4294967294, %s1314_s20  }
   0xd   : > { %p51_p0 = scmp.ne.s32.totalorder %s1306_s18, %s1302_s17  ;;  %p1726_p1 = scmp.eq.s32.totalorder %s1404_s21, 0 }
   0xe   : > { %p290_p3 = scmp.eq.s32.totalorder %s969_s22, 3  ;;  %p970_p5 = scmp.ge.s32.totalorder %s1314_s20, 1 }
   0xf   : > { %p1413_p4 = por %p1726_p1, %p51_p0  ;;  %p323_p7 = scmp.lt.s32.totalorder %s1314_s20, 5 }
  0x10   : > { %p1418_p6 = por %p290_p3, %p51_p0  ;;  %s1316_s26 = smov [#allocation7]  }
  0x11   : > { %s1737_s23 = scalar_select %p1413_p4, 1, 0 }
  0x12   : > { %s1738_s24 = scalar_select %p1418_p6, 1, 0 }
  0x13   : > { %p1423_p8 = pnand %p970_p5, %p323_p7  ;;  %s342_s27 = sshll.u32 %s1316_s26, 4  ;;  %s343_s27 = int_to_ptr.vmem [resolvable:$true] %s342_s27 }
  0x14   : > { %1739 = sst [smem:[#allocation15_spill]] %s1738_s24  ;;  %s1430_s28 = sadd.s32 1, %s1314_s20  }
  0x15   : > { %s1740_s25 = scalar_select %p1423_p8, 1, 0 }
  0x16   : > { %p1077_p9 = pneg %p1423_p8  ;;  %1741 = sst [smem:[#allocation16_spill]] %s1430_s28 }
  0x17   : > { %s35_s30 = ssub.s32 %s1314_s20, %s1430_s28  ;;  %s38_s13 = sadd.s32 1, %s1310_s19 }
  0x18   : > { %p1434_p10 = pnand %p1077_p9, %p1726_p1  ;;  %p1440_p11 = scmp.eq.s32.totalorder %s35_s30, 0 }
  0x19   : > { %s1744_s7 = sld [smem:[#allocation19_spill]] }
  0x1a   : > { %s1743_s12 = scalar_select %p1440_p11, 1, 0 }
  0x1b   : > { %p1154_p0 = pneg %p1434_p10 }
  0x1f   : > { %s1152_s16 = scalar_lea.hbm %s1744_s7, 16 }
  0x20   : > { %p1153_p13 = scmp.ne.s32.totalorder %s1744_s7, %s1152_s16  ;;  %p1159_p7 = scmp.lt.u32.totalorder %s1152_s16, %s1744_s7 }
  0x22   : > { %p1155_p3 = pnand %p1154_p0, %p1153_p13 }
  0x24   : > { %p1156_p5 = pneg %p1155_p3 }
  0x26   : > { %p1161_p9 = pnand %p1159_p7, %p1156_p5 }
  0x28   : > { %1164 = shalt.err (!%p1161_p9)
}
  0x29   : > { %s1165_s30 = scalar_lea.vmem %s343_s27, 16  ;;  %s1172_s14 = scalar_lea.vmem %s343_s27, 32 }
  0x2a   : > { %p1166_p1 = scmp.ne.s32.totalorder %s343_s27, %s1165_s30  ;;  %p1173_p6 = scmp.lt.s32.totalorder %s343_s27, %s343_s27 }
  0x2b   : > { %p1174_p4 = scmp.lt.s32.totalorder %s1172_s14, %s1165_s30 }
  0x2c   : > { %p1168_p2 = pnand %p1166_p1, %p1154_p0 }
  0x2d   : > { %p1175_p8 = por %p1174_p4, %p1173_p6 }
  0x2e   : > { %p1169_p12 = pneg %p1168_p2 }
  0x30   : > { %p1176_p11 = pnand %p1175_p8, %p1169_p12 }
  0x32   : > { %1179 = shalt.err (!%p1176_p11)
}
  0x33   : > { %1080 = dma.hbm_to_vmem [thread:$0]  (!%p1434_p10), %s1744_s7, 16, %s343_s27, [#allocation6]  }
  0x34   : > { %p1745_p1 = scmp.ne.s32.totalorder %s1743_s12, 0  ;;  %p46_p2 = scmp.eq.s32.totalorder %s1314_s20, 0 }
  0x35   : > { %p1747_p4 = scmp.ne.s32.totalorder %s1310_s19, %s1306_s18  ;;  %p1748_p6 = scmp.eq.s32.totalorder %s1404_s21, 3 }
  0x36   : > { %s1466_s24 = scalar_select %p1745_p1, %s1310_s19, %s38_s13  }
  0x37   : > { %p1474_p8 = por %p1748_p6, %p1747_p4  ;;  %p1093_p11 = scmp.lt.s32.totalorder %s1314_s20, 4 }
  0x38   : > { %1746 = sst [smem:[#allocation17_spill]] %s1466_s24  ;;  %s359_s29 = sand.u32 1, %s1310_s19  }
  0x39   : > { %s1749_s28 = scalar_select %p1474_p8, 1, 0 }
  0x3a   : > { %p1750_p12 = pmov %p1747_p4  ;;  %s1483_s16 = sshll.u32 %s359_s29, 3 }
  0x3b   : > { %s974_s26 = sshll.u32 %s1314_s20, 7  ;;  %s363_s13 = scalar_lea.vmem [#allocation2], %s1483_s16 }
  0x3c   : > { %p47_p13 = por %p46_p2, %p1750_p12  ;;  %s1489_s12 = scalar_lea.hbm %s1711_s0, %s974_s26 }
  0x3d   : > { %s370_s14 = sshll.u32 %s363_s13, 4  ;;  %s1501_s30 = scalar_lea.hbm %s1712_s1, %s974_s26  ;;  %s1496_s14 = int_to_ptr.vmem [resolvable:$true] %s370_s14 }
  0x3e   : > { %p1492_p10 = pnand %p1093_p11, %p47_p13  ;;  %s360_s27 = scalar_lea.sflag [#allocation3], %s359_s29 }
  0x3f   : > { %s1180_s24 = scalar_lea.hbm %s1489_s12, 128  ;;  %s1185_s17 = scalar_lea.hbm %s1711_s0, 512 }
  0x40   : > { %p1181_p0 = scmp.ne.s32.totalorder %s1489_s12, %s1180_s24  ;;  %p1182_p3 = pneg %p1492_p10 }
  0x41   : > { %p1186_p9 = scmp.lt.u32.totalorder %s1489_s12, %s1711_s0  ;;  %p1187_p1 = scmp.lt.u32.totalorder %s1185_s17, %s1180_s24 }
  0x42   : > { %p1183_p5 = pnand %p1182_p3, %p1181_p0  ;;  %p1189_p4 = scmp.lt.u32.totalorder %s1180_s24, %s1489_s12 }
  0x43   : > { %p1188_p2 = por %p1187_p1, %p1186_p9 }
  0x44   : > { %p1184_p7 = pneg %p1183_p5 }
  0x45   : > { %p1190_p6 = por %p1189_p4, %p1188_p2 }
  0x47   : > { %p1191_p11 = pnand %p1190_p6, %p1184_p7 }
  0x49   : > { %1194 = shalt.err (!%p1191_p11)
}
  0x4a   : > { %s1195_s7 = scalar_lea.vmem %s1496_s14, 128  ;;  %s1317_s19 = smov [#allocation2]  }
  0x4b   : > { %p1196_p12 = scmp.ne.s32.totalorder %s1496_s14, %s1195_s7  ;;  %s1200_s29 = sshll.u32 %s1317_s19, 4  ;;  %s1201_s29 = int_to_ptr.vmem [resolvable:$false] %s1200_s29 }
  0x4c   : > { %s1202_s4 = scalar_lea.vmem %s1201_s29, 256  ;;  %p1203_p5 = scmp.lt.s32.totalorder %s1496_s14, %s1201_s29 }
  0x4d   : > { %p1198_p13 = pnand %p1196_p12, %p1182_p3  ;;  %p1204_p9 = scmp.lt.s32.totalorder %s1202_s4, %s1195_s7 }
  0x4f   : > { %p1199_p0 = pneg %p1198_p13  ;;  %p1205_p1 = por %p1204_p9, %p1203_p5 }
  0x51   : > { %p1206_p2 = pnand %p1205_p1, %p1199_p0 }
  0x53   : > { %1209 = shalt.err (!%p1206_p2)
}
  0x54   : > { %1084 = dma.hbm_to_vmem [thread:$0]  (!%p1492_p10), %s1489_s12, 128, %s1496_s14, %s360_s27  }
  0x55   : > { %s377_s11 = sand.u32 1, %s1314_s20   ;;  %s381_s17 = scalar_lea.vmem [#allocation5], %s1483_s16 }
  0x56   : > { %s388_s24 = sshll.u32 %s381_s17, 4  ;;  %s378_s26 = scalar_lea.sflag [#allocation6], %s377_s11  ;;  %s389_s24 = int_to_ptr.vmem [resolvable:$true] %s388_s24 }
  0x57   : > { %s1210_s22 = scalar_lea.hbm %s1501_s30, 128  ;;  %s1215_s19 = scalar_lea.hbm %s1712_s1, 512 }
  0x58   : > { %p1211_p7 = scmp.ne.s32.totalorder %s1501_s30, %s1210_s22  ;;  %p1216_p11 = scmp.lt.u32.totalorder %s1501_s30, %s1712_s1 }
  0x59   : > { %p1217_p12 = scmp.lt.u32.totalorder %s1215_s19, %s1210_s22  ;;  %p1219_p0 = scmp.lt.u32.totalorder %s1210_s22, %s1501_s30 }
  0x5a   : > { %p1213_p4 = pnand %p1211_p7, %p1182_p3 }
  0x5b   : > { %p1218_p13 = por %p1217_p12, %p1216_p11 }
  0x5c   : > { %p1214_p6 = pneg %p1213_p4 }
  0x5d   : > { %p1220_p5 = por %p1219_p0, %p1218_p13 }
  0x5f   : > { %p1221_p9 = pnand %p1220_p5, %p1214_p6 }
  0x61   : > { %1224 = shalt.err (!%p1221_p9)
}
  0x62   : > { %s1225_s16 = scalar_lea.vmem %s389_s24, 128  ;;  %s1318_s12 = smov [#allocation5]  }
  0x63   : > { %p1226_p1 = scmp.ne.s32.totalorder %s389_s24, %s1225_s16  ;;  %s1230_s14 = sshll.u32 %s1318_s12, 4  ;;  %s1231_s14 = int_to_ptr.vmem [resolvable:$false] %s1230_s14 }
  0x64   : > { %s1232_s27 = scalar_lea.vmem %s1231_s14, 256  ;;  %p1233_p4 = scmp.lt.s32.totalorder %s389_s24, %s1231_s14 }
  0x65   : > { %p1228_p2 = pnand %p1226_p1, %p1182_p3  ;;  %p1234_p8 = scmp.lt.s32.totalorder %s1232_s27, %s1225_s16 }
  0x67   : > { %p1229_p7 = pneg %p1228_p2  ;;  %p1235_p11 = por %p1234_p8, %p1233_p4 }
  0x69   : > { %p1236_p12 = pnand %p1235_p11, %p1229_p7 }
  0x6b   : > { %1239 = shalt.err (!%p1236_p12)
}
  0x6c   : > { %1087 = dma.hbm_to_vmem [thread:$0]  (!%p1492_p10), %s1501_s30, 128, %s389_s24, %s378_s26  }
  0x6d   : > { %p1752_p6 = scmp.ne.s32.totalorder %s1740_s25, 0 }
  0x6e   : > { %s1552_s11 = sand.u32 (!%p1752_p6), 1, %s1306_s18   ;;  %p1753_p8 = scmp.ne.s32.totalorder (!%p1752_p6), %s1737_s23, 0 }
  0x6f   : > { %418 = sbr.rel (%p1752_p6) target bundleno = 862 (0x35e), region = 60  ;;  %s1555_s17 = sshll.u32 (!%p1752_p6), %s1552_s11, 3 }
  0x70   : > { %s421_s22 = scalar_lea.sflag (!%p1752_p6), [#allocation3], %s1552_s11  ;;  %s424_s13 = scalar_lea.vmem (!%p1752_p6), [#allocation2], %s1555_s17 }
  0x76   : > { %1285 = dma.done.wait (%p1753_p8), %s421_s22, 128  }
  0x77   : > { %1287 = vsyncadd (%p1753_p8), %s421_s22, 4294967168  ;;  %s429_s25 = sand.u32 1, %s1404_s21   ;;  %s433_s30 = scalar_lea.vmem [#allocation5], %s1555_s17 }
  0x78   : > { %s430_s15 = scalar_lea.sflag [#allocation6], %s429_s25 }
  0x79   : > { %1289 = dma.done.wait (%p1753_p8), %s430_s15, 128  }
  0x7a   : > { %1291 = vsyncadd (%p1753_p8), %s430_s15, 4294967168  ;;  %p1754_p10 = scmp.eq.s32.totalorder %s1404_s21, 0 }
  0x7c   : > { %1293 = dma.done.wait (%p1754_p10), [#allocation6], 16   ;;  %p1755_p3 = pmov %p1754_p10 }
  0x7d   : > { %p497_p13 = scmp.lt.s32.totalorder %s1404_s21, 3  ;;  %v1319_v0 = vmov 0   ;;  %v1320_v1 = vmov 0.0   ;;  %v1134_v3 = vld [vmem:[%s1716_s5] sm:$0xff]   ;;  %v1135_v5 = vld [vmem:[%s1716_s5 + $0x8] sm:$0xff]   ;;  %v1136_v6 = vld [vmem:[%s1716_s5 + $0x10] sm:$0xff]  }
  0x7e   : > { %1295 = vsyncadd (%p1755_p3), [#allocation6], 4294967280  ;;  %1132 = vset.pattern.permute.xlu0 %v1319_v0  ;;  %1027 = vmatprep.subr.bf16.mxu0 %v1320_v1  ;;  %vm1321_vm0 = vmmov 0   ;;  %v1137_v7 = vld [vmem:[%s1716_s5 + $0x18] sm:$0xff]   ;;  %v1142_v9 = vld [vmem:[%s1719_s8] sm:$0xff]   ;;  %s490_s7 = scalar_lea.vmem [#allocation8], %s1555_s17 }
  0x7f   : > { %s498_s24 = scalar_select %p497_p13, %s1404_s21, 3  ;;  %1133 = vset.pattern.permute.xlu1 %v1319_v0  ;;  %1047 = vmatprep.subr.bf16.mxu1 %v1320_v1  ;;  %v1138_v10 = vld [vmem:[%s1716_s5 + $0x20] sm:$0xff]   ;;  %v1143_v11 = vld [vmem:[%s1719_s8 + $0x8] sm:$0xff]   ;;  %v1144_v12 = vld [vmem:[%s1719_s8 + $0x10] sm:$0xff]  }
  0x80   : > { %1028 = vmatpush3.bf16.msra.mxu0 %v1134_v3  ;;  %1043 = vmatprep.mubr.msk.bf16.mxu0 %vm1321_vm0, %v1320_v1  ;;  %v1139_v13 = vld [vmem:[%s1716_s5 + $0x28] sm:$0xff]   ;;  %v1145_v14 = vld [vmem:[%s1719_s8 + $0x18] sm:$0xff]   ;;  %v1140_v15 = vld [vmem:[%s1716_s5 + $0x30] sm:$0xff]   ;;  %s804_s29 = sshll.u32 %s490_s7, 4  ;;  %s787_s12 = scalar_lea.sflag [#allocation4], %s1552_s11  ;;  %s805_s29 = int_to_ptr.vmem [resolvable:$true] %s804_s29 }
  0x81   : > { %s1577_s23 = sshll.u32 %s498_s24, 3  ;;  %1029 = vmatprep.subr.bf16.mxu0 %v1320_v1  ;;  %1063 = vmatprep.mubr.msk.bf16.mxu1 %vm1321_vm0, %v1320_v1  ;;  %v1141_v16 = vld [vmem:[%s1716_s5 + $0x38] sm:$0xff]   ;;  %v514_v20 = vld [vmem:[%s424_s13] sm:$0xff]  ;;  %v1148_v31 = vld [vmem:[%s1719_s8 + $0x30] sm:$0xff]   ;;  %s1240_s13 = scalar_lea.vmem %s805_s29, 128 }
  0x82   : > { %s500_s19 = scalar_lea.vmem %s1713_s2, %s1577_s23  ;;  %s504_s16 = scalar_lea.vmem %s1714_s3, %s1577_s23  ;;  %1048 = vmatpush3.bf16.msra.mxu1 %v1142_v9  ;;  %v515_v17 = vld [vmem:[%s433_s30] sm:$0xff]  ;;  %v1146_v29 = vld [vmem:[%s1719_s8 + $0x20] sm:$0xff]   ;;  %v1147_v30 = vld [vmem:[%s1719_s8 + $0x28] sm:$0xff]  }
  0x83   : > { %v516_v2 = vld [vmem:[%s500_s19] sm:$0xff]  ;;  %1049 = vmatprep.subr.bf16.mxu1 %v1320_v1  ;;  %v1149_v32 = vld [vmem:[%s1719_s8 + $0x38] sm:$0xff]   ;;  %s1006_s19 = sshll.u32 %s1404_s21, 7  ;;  %p1241_p0 = scmp.ne.s32.totalorder %s805_s29, %s1240_s13 }
  0x84   : > { %520 = vperm.xlu0 %1132, %v516_v2   ;;  %v517_v4 = vld [vmem:[%s504_s16] sm:$0xff]  ;;  %1030 = vmatpush3.bf16.msra.mxu0 %v1135_v5  ;;  %v531_v8 = vmul.f32 %v516_v2, %v516_v2  ;;  %s1666_s30 = scalar_lea.hbm %s1721_s10, %s1006_s19  ;;  %p1756_p5 = scmp.ne.s32.totalorder %s1749_s28, 0 }
  0x85   : > { %1031 = vmatprep.subr.bf16.mxu0 %v1320_v1  ;;  %v986_v33 = vld [vmem:[#allocation7] ss:$0 sm:$0xff]  ;;  %s1322_s14 = smov [#allocation8]  }
  0x86   : > { %535 = vperm.xlu1 %1133, %v531_v8   ;;  %1050 = vmatpush3.bf16.msra.mxu1 %v1143_v11  ;;  %v987_v35 = vld [vmem:[%s1717_s6] ss:$0 sm:$0xff]  ;;  %p1242_p9 = pnand %p1241_p0, %p1756_p5  ;;  %s1244_s27 = sshll.u32 %s1322_s14, 4  ;;  %s1245_s27 = int_to_ptr.vmem [resolvable:$false] %s1244_s27 }
  0x87   : > { %1051 = vmatprep.subr.bf16.mxu1 %v1320_v1  ;;  %v996_v45 = vld [vmem:[%s1720_s9] ss:$0 sm:$0xff]  ;;  %s1246_s22 = scalar_lea.vmem %s1245_s27, 256  ;;  %p1247_p2 = scmp.lt.s32.totalorder %s805_s29, %s1245_s27 }
  0x88   : > { %526 = vperm.xlu0 %1132, %v517_v4   ;;  %1032 = vmatpush3.bf16.msra.mxu0 %v1136_v6  ;;  %p1243_p1 = pneg %p1242_p9  ;;  %p1248_p7 = scmp.lt.s32.totalorder %s1246_s22, %s1240_s13 }
  0x89   : > { %1033 = vmatprep.subr.bf16.mxu0 %v1320_v1 }
  0x8a   : > { %1052 = vmatpush3.bf16.msra.mxu1 %v1144_v12  ;;  %p1249_p4 = por %p1248_p7, %p1247_p2 }
  0x8b   : > { %1053 = vmatprep.subr.bf16.mxu1 %v1320_v1 }
  0x8c   : > { %1034 = vmatpush3.bf16.msra.mxu0 %v1137_v7  ;;  %p1250_p11 = pnand %p1249_p4, %p1243_p1 }
  0x8d   : > { %1035 = vmatprep.subr.bf16.mxu0 %v1320_v1 }
  0x8e   : > { %1054 = vmatpush3.bf16.msra.mxu1 %v1145_v14 }
  0x8f   : > { %1055 = vmatprep.subr.bf16.mxu1 %v1320_v1 }
  0x90   : > { %1036 = vmatpush3.bf16.msra.mxu0 %v1138_v10 }
  0x91   : > { %1037 = vmatprep.subr.bf16.mxu0 %v1320_v1 }
  0x92   : > { %1056 = vmatpush3.bf16.msra.mxu1 %v1146_v29 }
  0x93   : > { %1057 = vmatprep.subr.bf16.mxu1 %v1320_v1 }
  0x94   : > { %1038 = vmatpush3.bf16.msra.mxu0 %v1139_v13 }
  0x95   : > { %1039 = vmatprep.subr.bf16.mxu0 %v1320_v1 }
  0x96   : > { %1058 = vmatpush3.bf16.msra.mxu1 %v1147_v30 }
  0x97   : > { %1059 = vmatprep.subr.bf16.mxu1 %v1320_v1 }
  0x98   : > { %1040 = vmatpush3.bf16.msra.mxu0 %v1140_v15 }
  0x99   : > { %1041 = vmatprep.subr.bf16.mxu0 %v1320_v1 }
  0x9a   : > { %1060 = vmatpush3.bf16.msra.mxu1 %v1148_v31 }
  0x9b   : > { %1061 = vmatprep.subr.bf16.mxu1 %v1320_v1 }
  0x9c   : > { %1042 = vmatpush3.bf16.msra.mxu0 %v1141_v16 }
  0x9e   : > { %1062 = vmatpush3.bf16.msra.mxu1 %v1149_v32 }
 0x103   : > { %v521_v18 = vpop.permute.xlu0 %520 }
 0x104   : > { %v775_v19 = vmul.f32 %v521_v18, %v515_v17  ;;  %v523_v22 = vmul.f32 %v521_v18, %v514_v20 }
 0x105   : > { %v536_v34 = vpop.permute.xlu1 %535 }
 0x106   : > { %v544_v36 = vmul.f32 %v986_v33, %v536_v34 }
 0x107   : > { %v527_v21 = vpop.permute.xlu0 %526 }
 0x108   : > { %v529_v23 = vmul.f32 %v527_v21, %v515_v17  ;;  %v776_v24 = vmul.f32 %v527_v21, %v514_v20 }
 0x10a   : > { %v530_v25 = vadd.f32 %v529_v23, %v523_v22  ;;  %v777_v26 = vsub.f32 %v775_v19, %v776_v24 }
 0x10c   : > { %v771_v27 = vmul.f32 %v530_v25, %v521_v18  ;;  %v545_v28 = vpack.c.bf16 %v530_v25, %v530_v25 }
 0x10e   : > { %1044 = vmatmul.mubr.bf16.vlgmr.msra.gmra.mrb[0].mxu0 %v545_v28 }
 0x1e1   : > { %v651_v37 = vpop.f32.mrb[0].mxu0 }
 0x1e2   : > { %v652_v38 = vadd.f32 %v987_v35, %v651_v37  ;;  %v1045_v39 = vpop.f32.mrb[1].mxu0 }
 0x1e3   : > { %v654_v40 = vpop.f32.mrb[2].mxu0 }
 0x1e4   : > { %v657_v41 = vadd.f32 %v652_v38, %v544_v36  ;;  %v1046_v42 = vpop.f32.mrb[3].mxu0 }
 0x1e6   : > { %1150 = vtanh.f32 %v657_v41 }
 0x1f0   : > { %v1151_v43 = vpop.eup %1150 }
 0x1f1   : > { %v659_v44 = vpack.c.bf16 %v1151_v43, %v1151_v43 }
 0x1f3   : > { %1064 = vmatmul.mubr.bf16.vlgmr.msra.gmra.mrb[0].mxu1 %v659_v44 }
 0x2c6   : > { %v765_v46 = vpop.f32.mrb[0].mxu1 }
 0x2c7   : > { %v766_v47 = vadd.f32 %v996_v45, %v765_v46  ;;  %v1065_v48 = vpop.f32.mrb[1].mxu1 }
 0x2c8   : > { %v768_v49 = vpop.f32.mrb[2].mxu1 }
 0x2c9   : > { %v772_v50 = vmul.f32 %v766_v47, %v527_v21  ;;  %v1066_v51 = vpop.f32.mrb[3].mxu1  ;;  %v778_v52 = vsub.f32 %v766_v47, %v777_v26 }
 0x2cb   : > { %v773_v53 = vsub.f32 %v771_v27, %v772_v50  ;;  %v779_v54 = vmul.f32 %v778_v52, %v778_v52 }
 0x2cd   : > { %780 = vadd.xlane.f32.xlu1 %v779_v54  ;;  %774 = vst [vmem:[%s490_s7] sm:$0xff] %v773_v53 }
 0x2ce   : > { %1253 = shalt.err (!%p1250_p11)
}
 0x2cf   : > { %s1254_s21 = scalar_lea.hbm %s1666_s30, 128  ;;  %s1258_s25 = scalar_lea.hbm %s1721_s10, 512 }
 0x2d0   : > { %p1255_p12 = scmp.ne.s32.totalorder %s1666_s30, %s1254_s21  ;;  %p1259_p10 = scmp.lt.u32.totalorder %s1666_s30, %s1721_s10 }
 0x2d1   : > { %p1260_p3 = scmp.lt.u32.totalorder %s1258_s25, %s1254_s21  ;;  %p1262_p0 = scmp.lt.u32.totalorder %s1254_s21, %s1666_s30 }
 0x2d2   : > { %p1256_p6 = pnand %p1255_p12, %p1756_p5 }
 0x2d3   : > { %p1261_p13 = por %p1260_p3, %p1259_p10 }
 0x2d4   : > { %p1257_p8 = pneg %p1256_p6 }
 0x2d5   : > { %p1263_p9 = por %p1262_p0, %p1261_p13 }
 0x2d7   : > { %p1264_p1 = pnand %p1263_p9, %p1257_p8 }
 0x2d9   : > { %1267 = shalt.err (!%p1264_p1)
}
 0x2da   : > { %1075 = dma.vmem_to_hbm [thread:$0]  (%p1756_p5), %s805_s29, 128, %s1666_s30, %s787_s12   ;;  %vm784_vm1 = vcmask 7168  }
 0x2db   : > { %s1757_s19 = sld [smem:[#allocation18_spill]]  ;;  %s1758_s14 = sld [smem:[#allocation20_spill]] }
 0x2e1   : > { %s508_s4 = scalar_lea.vmem %s1757_s19, %s1577_s23  ;;  %s512_s27 = scalar_lea.vmem %s1758_s14, %s1577_s23 }
 0x2e2   : > { %v782_v55 = vld [vmem:[%s508_s4] sm:$0xff] }
 0x35a   : > { %v781_v56 = vpop.xlane.xlu1 %780 }
 0x35b   : > { %v783_v57 = vmul.f32 %v782_v55, %v781_v56 }
 0x35d   : > { %785 = vst.msk [vmem:[%s512_s27] sm:$0xff] %vm784_vm1, %v783_v57 }
 0x35e PF: > { %s1759_s28 = sld [smem:[#allocation13_spill]]  ;;  %s1760_s22 = sld [smem:[#allocation15_spill]] }
 0x35f   : > { %p1095_p2 = scmp.ge.s32.totalorder %s1314_s20, 2 }
 0x364   : > { %s819_s21 = sand.u32 1, %s1759_s28   ;;  %p1761_p5 = scmp.ne.s32.totalorder %s1760_s22, 0 }
 0x365   : > { %s820_s29 = scalar_lea.sflag [#allocation4], %s819_s21 }
 0x366   : > { %p1089_p7 = pnand %p1095_p2, %p1761_p5 }
 0x368   : > { %1297 = dma.done.wait (!%p1089_p7), %s820_s29, 128  }
 0x369   : > { %1299 = vsyncadd (!%p1089_p7), %s820_s29, 4294967168  ;;  %s1762_s20 = sld [smem:[#allocation16_spill]]  ;;  %s1763_s30 = sld [smem:[#allocation14_spill]] }
 0x36a   : > { %s1764_s19 = sld [smem:[#allocation17_spill]]  ;;  %s1765_s17 = smov %s1306_s18 }
 0x36f   : > { %p28_p4 = scmp.ge.s32.totalorder %s1762_s20, 6   ;;  %s1766_s18 = smov %s1763_s30 }
 0x371   :  { %30 = sbr.rel (!%p28_p4) target bundleno = 11 (0xb), region = 143 }
 0x378   :  { %832 = vsyncpa [#allocation3], 1 }
 0x379   :  { %834 = vsyncpa [#allocation3 + $0x1], 1 }
 0x37a   :  { %835 = vsyncpa [#allocation6], 1 }
 0x37b   :  { %837 = vsyncpa [#allocation6 + $0x1], 1 }
 0x37c   :  { %838 = vsyncpa [#allocation4], 1 }
 0x37d   :  { %840 = vsyncpa [#allocation4 + $0x1], 1 }

</bundles_post_ra>
